<compile_context>
chip_gen: v6e
topology: v6e:2x2x1
jax: 0.10.0
libtpu: 0.0.40
codegen_flags: <defaults>
</compile_context>

<pallas_src>
import jax
import jax.numpy as jnp
from jax import lax
from jax.experimental import pallas as pl
from jax.experimental.pallas import tpu as pltpu


def attention_kernel(x_ref, z_ref, wq_ref, bq_ref, wk_ref, bk_ref,
                     wv_ref, bv_ref, wf_ref, bf_ref, gamma_ref,
                     out_ref, attn_ref):
    B, C, N = x_ref.shape
    Ct = z_ref.shape[1]

    # Fold batch into the lane axis: (B, C, N) -> (C, B*N) = (32, 128).
    # Cheap in-VMEM lane concat; makes the projection matmuls 128-lane dense.
    x = jnp.concatenate([x_ref[b] for b in range(B)], axis=-1)   # (C,  B*N)
    z = jnp.concatenate([z_ref[b] for b in range(B)], axis=-1)   # (Ct, B*N)

    # 1x1 convs == (Cout, Cin) @ (Cin, B*N) MXU matmuls, once for all batches.
    q = jnp.dot(wq_ref[...], z, preferred_element_type=jnp.float32) + bq_ref[...]  # (C8p, B*N)
    k = jnp.dot(wk_ref[...], x, preferred_element_type=jnp.float32) + bk_ref[...]  # (C8p, B*N)
    v = jnp.dot(wv_ref[...], x, preferred_element_type=jnp.float32) + bv_ref[...]  # (C,   B*N)

    # Per-batch attention on static lane slices (B=2, unrolled at trace time).
    ov_parts = []
    for b in range(B):
        lo, hi = b * N, (b + 1) * N
        qb = q[:, lo:hi]                         # (C8p, N)
        kb = k[:, lo:hi]                         # (C8p, N)
        vb = v[:, lo:hi]                         # (C,   N)

        # energy[i, j] = sum_c qb[c, i] * kb[c, j]  (no materialized transpose)
        energy = lax.dot_general(qb, kb, (((0,), (0,)), ((), ())),
                                 preferred_element_type=jnp.float32)    # (N, N)

        # stable softmax over last dim (matches torch nn.Softmax(dim=-1))
        energy = energy - jnp.max(energy, axis=-1, keepdims=True)
        p = jnp.exp(energy)
        denom = jnp.sum(p, axis=-1, keepdims=True)
        attn = p * pl.reciprocal(denom, approx=False)                    # (N, N)
        attn_ref[b] = attn

        # torch: out = bmm(V_(C,N), attn^T) -> ov[c, i] = sum_j v[c, j] * attn[i, j]
        ov_parts.append(lax.dot_general(vb, attn, (((1,), (1,)), ((), ())),
                                        preferred_element_type=jnp.float32))  # (C, N)

    ov = jnp.concatenate(ov_parts, axis=-1)                              # (C, B*N)

    # final 1x1 conv + residual with gamma, fused across both batch elements.
    o = jnp.dot(wf_ref[...], ov, preferred_element_type=jnp.float32) + bf_ref[...]
    out = gamma_ref[0, 0] * o + x                                        # (C, B*N)
    for b in range(B):
        out_ref[b] = out[:, b * N:(b + 1) * N]


def attention_layer_forward(x_nchw, z_nchw, params):
    """params = (wq, bq, wk, bk, wv, bv, wf, bf, gamma)
       Conv2d 1x1 weights in native PyTorch (Cout, Cin) layout:
         wq: (C8, Ct), wk: (C8, C), wv: (C, C), wf: (C, C)
       biases are (Cout, 1); gamma is (1, 1) (scalar, SMEM)."""
    B, C, H, W = x_nchw.shape
    Ct = z_nchw.shape[1]
    N = H * W
    wq, bq, wk, bk, wv, bv, wf, bf, gamma = params
    C8 = wq.shape[0]

    # Zero-pad query/key projection rows to a full 8-sublane tile.
    # Zero rows of q and k contribute nothing to q^T k -> math unchanged.
    C8p = max(8, ((C8 + 7) // 8) * 8)
    pad = C8p - C8
    wq_p = jnp.pad(wq, ((0, pad), (0, 0)))
    bq_p = jnp.pad(bq, ((0, pad), (0, 0)))
    wk_p = jnp.pad(wk, ((0, pad), (0, 0)))
    bk_p = jnp.pad(bk, ((0, pad), (0, 0)))

    # NCHW -> (B, C, N): pure reshape, no XLA transpose kernels.
    x = x_nchw.reshape(B, C, N)
    z = z_nchw.reshape(B, Ct, N)

    # Advisory cost hint so XLA can schedule around this tiny custom call.
    flops = (2 * C8p * Ct * B * N          # q projection
             + 2 * C8p * C * B * N         # k projection
             + 2 * C * C * B * N           # v projection
             + 2 * B * N * N * C8p         # energy
             + 2 * B * C * N * N           # ov
             + 2 * C * C * B * N           # final conv
             + 4 * B * C * N)              # bias/residual/scale
    bytes_accessed = 4 * (2 * B * C * N + B * Ct * N + B * N * N
                          + C8p * (Ct + C + 2) + C * (2 * C + 2) + 1)

    out, attn = pl.pallas_call(
        attention_kernel,
        out_shape=(
            jax.ShapeDtypeStruct((B, C, N), jnp.float32),
            jax.ShapeDtypeStruct((B, N, N), jnp.float32),
        ),
        grid_spec=pltpu.PrefetchScalarGridSpec(
            num_scalar_prefetch=0,
            grid=(1,),                                           # single invocation
            in_specs=[
                pl.BlockSpec((B, C, N), lambda i: (0, 0, 0)),    # x
                pl.BlockSpec((B, Ct, N), lambda i: (0, 0, 0)),   # z
                pl.BlockSpec((C8p, Ct), lambda i: (0, 0)),       # wq (padded)
                pl.BlockSpec((C8p, 1), lambda i: (0, 0)),        # bq (padded)
                pl.BlockSpec((C8p, C), lambda i: (0, 0)),        # wk (padded)
                pl.BlockSpec((C8p, 1), lambda i: (0, 0)),        # bk (padded)
                pl.BlockSpec((C, C), lambda i: (0, 0)),          # wv
                pl.BlockSpec((C, 1), lambda i: (0, 0)),          # bv
                pl.BlockSpec((C, C), lambda i: (0, 0)),          # wf
                pl.BlockSpec((C, 1), lambda i: (0, 0)),          # bf
                pl.BlockSpec(memory_space=pltpu.MemorySpace.SMEM),  # gamma scalar
            ],
            out_specs=[
                pl.BlockSpec((B, C, N), lambda i: (0, 0, 0)),
                pl.BlockSpec((B, N, N), lambda i: (0, 0, 0)),
            ],
        ),
        compiler_params=pltpu.CompilerParams(
            dimension_semantics=("arbitrary",)),
        cost_estimate=pl.CostEstimate(flops=flops,
                                      transcendentals=B * N * N,
                                      bytes_accessed=bytes_accessed),
    )(x, z, wq_p, bq_p, wk_p, bk_p, wv, bv, wf, bf, gamma)

    # (B, C, N) -> NCHW: pure reshape, no transpose.
    return out.reshape(B, C, H, W), attn


def reference_forward(x_nchw, z_nchw, params):
    """Pure-JAX reference mirroring the PyTorch module."""
    B, C, H, W = x_nchw.shape
    Ct = z_nchw.shape[1]
    N = H * W
    wq, bq, wk, bk, wv, bv, wf, bf, gamma = params
    x = x_nchw.reshape(B, C, N)
    z = z_nchw.reshape(B, Ct, N)
    q = jnp.einsum('oc,bcn->bon', wq, z) + bq[None]     # (B, C8, N)
    k = jnp.einsum('oc,bcn->bon', wk, x) + bk[None]     # (B, C8, N)
    v = jnp.einsum('oc,bcn->bon', wv, x) + bv[None]     # (B, C, N)
    energy = jnp.einsum('bci,bcj->bij', q, k)           # (B, N, N)
    attn = jax.nn.softmax(energy, axis=-1)
    ov = jnp.einsum('bcj,bij->bci', v, attn)            # (B, C, N)
    o = jnp.einsum('oc,bcn->bon', wf, ov) + bf[None]
    out = gamma[0, 0] * o + x
    return out.reshape(B, C, H, W), attn


if __name__ == "__main__":
    B, C, Ct, H, W = 2, 32, 16, 8, 8      # in_dim=32, texture_dim=16
    C8 = C // 8
    N = H * W
    key = jax.random.PRNGKey(0)
    kx, kz, k1, k2, k3, k4, k5, k6, k7, k8 = jax.random.split(key, 10)

    x = jax.random.normal(kx, (B, C, H, W), dtype=jnp.float32)
    z = jax.random.normal(kz, (B, Ct, H, W), dtype=jnp.float32)

    # Conv2d 1x1 weights kept in PyTorch (Cout, Cin) layout; biases (Cout, 1).
    wq = 0.1 * jax.random.normal(k1, (C8, Ct), dtype=jnp.float32)
    bq = 0.05 * jax.random.normal(k2, (C8, 1), dtype=jnp.float32)
    wk = 0.1 * jax.random.normal(k3, (C8, C), dtype=jnp.float32)
    bk = 0.05 * jax.random.normal(k4, (C8, 1), dtype=jnp.float32)
    wv = 0.1 * jax.random.normal(k5, (C, C), dtype=jnp.float32)
    bv = 0.05 * jax.random.normal(k6, (C, 1), dtype=jnp.float32)
    wf = 0.1 * jax.random.normal(k7, (C, C), dtype=jnp.float32)
    bf = 0.05 * jax.random.normal(k8, (C, 1), dtype=jnp.float32)
    # Module inits gamma to 0 (out == x); use 0.5 so the attention path is exercised.
    gamma = jnp.full((1, 1), 0.5, dtype=jnp.float32)

    params = (wq, bq, wk, bk, wv, bv, wf, bf, gamma)

    out, attn = attention_layer_forward(x, z, params)
    jax.block_until_ready((out, attn))

    out_ref, attn_ref = reference_forward(x, z, params)
    assert out.shape == (B, C, H, W) and attn.shape == (B, N, N)
    assert jnp.allclose(out, out_ref, atol=1e-4, rtol=1e-4)
    assert jnp.allclose(attn, attn_ref, atol=1e-5, rtol=1e-5)
    print("KERNEL_OK")
</pallas_src>

<mosaic_0001>
module attributes {stable_mosaic.version = 11 : i64} {
  func.func @attention_kernel(%arg0: i32, %arg1: memref<2x32x64xf32, #tpu.memory_space<vmem>>, %arg2: memref<2x16x64xf32, #tpu.memory_space<vmem>>, %arg3: memref<8x16xf32, #tpu.memory_space<vmem>>, %arg4: memref<8x1xf32, #tpu.memory_space<vmem>>, %arg5: memref<8x32xf32, #tpu.memory_space<vmem>>, %arg6: memref<8x1xf32, #tpu.memory_space<vmem>>, %arg7: memref<32x32xf32, #tpu.memory_space<vmem>>, %arg8: memref<32x1xf32, #tpu.memory_space<vmem>>, %arg9: memref<32x32xf32, #tpu.memory_space<vmem>>, %arg10: memref<32x1xf32, #tpu.memory_space<vmem>>, %arg11: memref<1x1xf32, #tpu.memory_space<smem>>, %arg12: memref<2x32x64xf32, #tpu.memory_space<vmem>>, %arg13: memref<2x64x64xf32, #tpu.memory_space<vmem>>) attributes {dimension_semantics = [#tpu.dimension_semantics<arbitrary>], iteration_bounds = array<i64: 1>, scalar_prefetch = 0 : i64, scratch_operands = 0 : i64, tpu.core_type = #tpu.core_type<tc>, window_params = [{pipeline_mode = #tpu.pipeline_mode<synchronous>, transform_indices = @transform_0, window_bounds = array<i64: 2, 32, 64>}, {pipeline_mode = #tpu.pipeline_mode<synchronous>, transform_indices = @transform_1, window_bounds = array<i64: 2, 16, 64>}, {pipeline_mode = #tpu.pipeline_mode<synchronous>, transform_indices = @transform_2, window_bounds = array<i64: 8, 16>}, {pipeline_mode = #tpu.pipeline_mode<synchronous>, transform_indices = @transform_3, window_bounds = array<i64: 8, 1>}, {pipeline_mode = #tpu.pipeline_mode<synchronous>, transform_indices = @transform_4, window_bounds = array<i64: 8, 32>}, {pipeline_mode = #tpu.pipeline_mode<synchronous>, transform_indices = @transform_5, window_bounds = array<i64: 8, 1>}, {pipeline_mode = #tpu.pipeline_mode<synchronous>, transform_indices = @transform_6, window_bounds = array<i64: 32, 32>}, {pipeline_mode = #tpu.pipeline_mode<synchronous>, transform_indices = @transform_7, window_bounds = array<i64: 32, 1>}, {pipeline_mode = #tpu.pipeline_mode<synchronous>, transform_indices = @transform_8, window_bounds = array<i64: 32, 32>}, {pipeline_mode = #tpu.pipeline_mode<synchronous>, transform_indices = @transform_9, window_bounds = array<i64: 32, 1>}, {transform_indices = @transform_10, window_bounds = array<i64: 1, 1>}, {pipeline_mode = #tpu.pipeline_mode<synchronous>, transform_indices = @transform_11, window_bounds = array<i64: 2, 32, 64>}, {pipeline_mode = #tpu.pipeline_mode<synchronous>, transform_indices = @transform_12, window_bounds = array<i64: 2, 64, 64>}]} {
    %c0 = arith.constant 0 : index
    %c0_0 = arith.constant 0 : index
    %c0_1 = arith.constant 0 : index
    %0 = vector.load %arg1[%c0, %c0_0, %c0_1] : memref<2x32x64xf32, #tpu.memory_space<vmem>>, vector<1x32x64xf32>
    %1 = vector.shape_cast %0 : vector<1x32x64xf32> to vector<32x64xf32>
    %c1 = arith.constant 1 : index
    %c0_2 = arith.constant 0 : index
    %c0_3 = arith.constant 0 : index
    %2 = vector.load %arg1[%c1, %c0_2, %c0_3] : memref<2x32x64xf32, #tpu.memory_space<vmem>>, vector<1x32x64xf32>
    %3 = vector.shape_cast %2 : vector<1x32x64xf32> to vector<32x64xf32>
    %4 = tpu.concatenate %1, %3 in 1 : vector<32x64xf32>, vector<32x64xf32> -> vector<32x128xf32>
    %c0_4 = arith.constant 0 : index
    %c0_5 = arith.constant 0 : index
    %c0_6 = arith.constant 0 : index
    %5 = vector.load %arg2[%c0_4, %c0_5, %c0_6] : memref<2x16x64xf32, #tpu.memory_space<vmem>>, vector<1x16x64xf32>
    %6 = vector.shape_cast %5 : vector<1x16x64xf32> to vector<16x64xf32>
    %c1_7 = arith.constant 1 : index
    %c0_8 = arith.constant 0 : index
    %c0_9 = arith.constant 0 : index
    %7 = vector.load %arg2[%c1_7, %c0_8, %c0_9] : memref<2x16x64xf32, #tpu.memory_space<vmem>>, vector<1x16x64xf32>
    %8 = vector.shape_cast %7 : vector<1x16x64xf32> to vector<16x64xf32>
    %9 = tpu.concatenate %6, %8 in 1 : vector<16x64xf32>, vector<16x64xf32> -> vector<16x128xf32>
    %c0_10 = arith.constant 0 : index
    %c0_11 = arith.constant 0 : index
    %10 = vector.load %arg3[%c0_10, %c0_11] : memref<8x16xf32, #tpu.memory_space<vmem>>, vector<8x16xf32>
    %cst = arith.constant dense<0.000000e+00> : vector<8x128xf32>
    %11 = tpu.matmul %10, %9, %cst {dimension_numbers = #tpu.dot_dimension_numbers<[1], [0], [0], [1], [0, 0, 1, 1], [], []>} : vector<8x16xf32>, vector<16x128xf32>, vector<8x128xf32> -> vector<8x128xf32>
    %c0_12 = arith.constant 0 : index
    %c0_13 = arith.constant 0 : index
    %12 = vector.load %arg4[%c0_12, %c0_13] : memref<8x1xf32, #tpu.memory_space<vmem>>, vector<8x1xf32>
    %13 = vector.broadcast %12 : vector<8x1xf32> to vector<8x128xf32>
    %14 = arith.addf %11, %13 : vector<8x128xf32>
    %c0_14 = arith.constant 0 : index
    %c0_15 = arith.constant 0 : index
    %15 = vector.load %arg5[%c0_14, %c0_15] : memref<8x32xf32, #tpu.memory_space<vmem>>, vector<8x32xf32>
    %cst_16 = arith.constant dense<0.000000e+00> : vector<8x128xf32>
    %16 = tpu.matmul %15, %4, %cst_16 {dimension_numbers = #tpu.dot_dimension_numbers<[1], [0], [0], [1], [0, 0, 1, 1], [], []>} : vector<8x32xf32>, vector<32x128xf32>, vector<8x128xf32> -> vector<8x128xf32>
    %c0_17 = arith.constant 0 : index
    %c0_18 = arith.constant 0 : index
    %17 = vector.load %arg6[%c0_17, %c0_18] : memref<8x1xf32, #tpu.memory_space<vmem>>, vector<8x1xf32>
    %18 = vector.broadcast %17 : vector<8x1xf32> to vector<8x128xf32>
    %19 = arith.addf %16, %18 : vector<8x128xf32>
    %c0_19 = arith.constant 0 : index
    %c0_20 = arith.constant 0 : index
    %20 = vector.load %arg7[%c0_19, %c0_20] : memref<32x32xf32, #tpu.memory_space<vmem>>, vector<32x32xf32>
    %cst_21 = arith.constant dense<0.000000e+00> : vector<32x128xf32>
    %21 = tpu.matmul %20, %4, %cst_21 {dimension_numbers = #tpu.dot_dimension_numbers<[1], [0], [0], [1], [0, 0, 1, 1], [], []>} : vector<32x32xf32>, vector<32x128xf32>, vector<32x128xf32> -> vector<32x128xf32>
    %c0_22 = arith.constant 0 : index
    %c0_23 = arith.constant 0 : index
    %22 = vector.load %arg8[%c0_22, %c0_23] : memref<32x1xf32, #tpu.memory_space<vmem>>, vector<32x1xf32>
    %23 = vector.broadcast %22 : vector<32x1xf32> to vector<32x128xf32>
    %24 = arith.addf %21, %23 : vector<32x128xf32>
    %25 = vector.extract_strided_slice %14 {offsets = [0, 0], sizes = [8, 64], strides = [1, 1]} : vector<8x128xf32> to vector<8x64xf32>
    %26 = vector.extract_strided_slice %19 {offsets = [0, 0], sizes = [8, 64], strides = [1, 1]} : vector<8x128xf32> to vector<8x64xf32>
    %27 = vector.extract_strided_slice %24 {offsets = [0, 0], sizes = [32, 64], strides = [1, 1]} : vector<32x128xf32> to vector<32x64xf32>
    %cst_24 = arith.constant dense<0.000000e+00> : vector<64x64xf32>
    %28 = tpu.matmul %25, %26, %cst_24 {dimension_numbers = #tpu.dot_dimension_numbers<[0], [0], [1], [1], [0, 1, 1, 1], [], []>} : vector<8x64xf32>, vector<8x64xf32>, vector<64x64xf32> -> vector<64x64xf32>
    %cst_25 = arith.constant dense<0xFF800000> : vector<64xf32>
    %29 = vector.multi_reduction <maximumf>, %28, %cst_25 [1] : vector<64x64xf32> to vector<64xf32>
    %30 = vector.shape_cast %29 : vector<64xf32> to vector<64x1xf32>
    %31 = vector.broadcast %30 : vector<64x1xf32> to vector<64x64xf32>
    %32 = arith.subf %28, %31 : vector<64x64xf32>
    %33 = math.exp %32 : vector<64x64xf32>
    %cst_26 = arith.constant dense<0.000000e+00> : vector<64xf32>
    %34 = vector.multi_reduction <add>, %33, %cst_26 [1] : vector<64x64xf32> to vector<64xf32>
    %35 = vector.shape_cast %34 : vector<64xf32> to vector<64x1xf32>
    %36 = tpu.reciprocal %35 : vector<64x1xf32> -> vector<64x1xf32>
    %37 = vector.broadcast %36 : vector<64x1xf32> to vector<64x64xf32>
    %38 = arith.mulf %33, %37 : vector<64x64xf32>
    %c0_27 = arith.constant 0 : index
    %c0_28 = arith.constant 0 : index
    %c0_29 = arith.constant 0 : index
    %39 = vector.load %arg13[%c0_27, %c0_28, %c0_29] : memref<2x64x64xf32, #tpu.memory_space<vmem>>, vector<1x64x64xf32>
    %40 = vector.shape_cast %39 : vector<1x64x64xf32> to vector<64x64xf32>
    %41 = vector.shape_cast %38 : vector<64x64xf32> to vector<1x64x64xf32>
    tpu.vector_store %arg13[%c0_27, %c0_28, %c0_29], %41 {strides = array<i32>} : memref<2x64x64xf32, #tpu.memory_space<vmem>>, vector<1x64x64xf32>,
    %cst_30 = arith.constant dense<0.000000e+00> : vector<32x64xf32>
    %42 = tpu.matmul %27, %38, %cst_30 {dimension_numbers = #tpu.dot_dimension_numbers<[1], [1], [0], [0], [0, 0, 1, 0], [], []>} : vector<32x64xf32>, vector<64x64xf32>, vector<32x64xf32> -> vector<32x64xf32>
    %43 = vector.extract_strided_slice %14 {offsets = [0, 64], sizes = [8, 64], strides = [1, 1]} : vector<8x128xf32> to vector<8x64xf32>
    %44 = vector.extract_strided_slice %19 {offsets = [0, 64], sizes = [8, 64], strides = [1, 1]} : vector<8x128xf32> to vector<8x64xf32>
    %45 = vector.extract_strided_slice %24 {offsets = [0, 64], sizes = [32, 64], strides = [1, 1]} : vector<32x128xf32> to vector<32x64xf32>
    %cst_31 = arith.constant dense<0.000000e+00> : vector<64x64xf32>
    %46 = tpu.matmul %43, %44, %cst_31 {dimension_numbers = #tpu.dot_dimension_numbers<[0], [0], [1], [1], [0, 1, 1, 1], [], []>} : vector<8x64xf32>, vector<8x64xf32>, vector<64x64xf32> -> vector<64x64xf32>
    %cst_32 = arith.constant dense<0xFF800000> : vector<64xf32>
    %47 = vector.multi_reduction <maximumf>, %46, %cst_32 [1] : vector<64x64xf32> to vector<64xf32>
    %48 = vector.shape_cast %47 : vector<64xf32> to vector<64x1xf32>
    %49 = vector.broadcast %48 : vector<64x1xf32> to vector<64x64xf32>
    %50 = arith.subf %46, %49 : vector<64x64xf32>
    %51 = math.exp %50 : vector<64x64xf32>
    %cst_33 = arith.constant dense<0.000000e+00> : vector<64xf32>
    %52 = vector.multi_reduction <add>, %51, %cst_33 [1] : vector<64x64xf32> to vector<64xf32>
    %53 = vector.shape_cast %52 : vector<64xf32> to vector<64x1xf32>
    %54 = tpu.reciprocal %53 : vector<64x1xf32> -> vector<64x1xf32>
    %55 = vector.broadcast %54 : vector<64x1xf32> to vector<64x64xf32>
    %56 = arith.mulf %51, %55 : vector<64x64xf32>
    %c1_34 = arith.constant 1 : index
    %c0_35 = arith.constant 0 : index
    %c0_36 = arith.constant 0 : index
    %57 = vector.load %arg13[%c1_34, %c0_35, %c0_36] : memref<2x64x64xf32, #tpu.memory_space<vmem>>, vector<1x64x64xf32>
    %58 = vector.shape_cast %57 : vector<1x64x64xf32> to vector<64x64xf32>
    %59 = vector.shape_cast %56 : vector<64x64xf32> to vector<1x64x64xf32>
    tpu.vector_store %arg13[%c1_34, %c0_35, %c0_36], %59 {strides = array<i32>} : memref<2x64x64xf32, #tpu.memory_space<vmem>>, vector<1x64x64xf32>,
    %cst_37 = arith.constant dense<0.000000e+00> : vector<32x64xf32>
    %60 = tpu.matmul %45, %56, %cst_37 {dimension_numbers = #tpu.dot_dimension_numbers<[1], [1], [0], [0], [0, 0, 1, 0], [], []>} : vector<32x64xf32>, vector<64x64xf32>, vector<32x64xf32> -> vector<32x64xf32>
    %61 = tpu.concatenate %42, %60 in 1 : vector<32x64xf32>, vector<32x64xf32> -> vector<32x128xf32>
    %c0_38 = arith.constant 0 : index
    %c0_39 = arith.constant 0 : index
    %62 = vector.load %arg9[%c0_38, %c0_39] : memref<32x32xf32, #tpu.memory_space<vmem>>, vector<32x32xf32>
    %cst_40 = arith.constant dense<0.000000e+00> : vector<32x128xf32>
    %63 = tpu.matmul %62, %61, %cst_40 {dimension_numbers = #tpu.dot_dimension_numbers<[1], [0], [0], [1], [0, 0, 1, 1], [], []>} : vector<32x32xf32>, vector<32x128xf32>, vector<32x128xf32> -> vector<32x128xf32>
    %c0_41 = arith.constant 0 : index
    %c0_42 = arith.constant 0 : index
    %64 = vector.load %arg10[%c0_41, %c0_42] : memref<32x1xf32, #tpu.memory_space<vmem>>, vector<32x1xf32>
    %65 = vector.broadcast %64 : vector<32x1xf32> to vector<32x128xf32>
    %66 = arith.addf %63, %65 : vector<32x128xf32>
    %c0_43 = arith.constant 0 : index
    %c0_44 = arith.constant 0 : index
    %67 = memref.load %arg11[%c0_43, %c0_44] : memref<1x1xf32, #tpu.memory_space<smem>>
    %68 = vector.broadcast %67 : f32 to vector<32x128xf32>
    %69 = arith.mulf %68, %66 : vector<32x128xf32>
    %70 = arith.addf %69, %4 : vector<32x128xf32>
    %71 = vector.extract_strided_slice %70 {offsets = [0, 0], sizes = [32, 64], strides = [1, 1]} : vector<32x128xf32> to vector<32x64xf32>
    %c0_45 = arith.constant 0 : index
    %c0_46 = arith.constant 0 : index
    %c0_47 = arith.constant 0 : index
    %72 = vector.load %arg12[%c0_45, %c0_46, %c0_47] : memref<2x32x64xf32, #tpu.memory_space<vmem>>, vector<1x32x64xf32>
    %73 = vector.shape_cast %72 : vector<1x32x64xf32> to vector<32x64xf32>
    %74 = vector.shape_cast %71 : vector<32x64xf32> to vector<1x32x64xf32>
    tpu.vector_store %arg12[%c0_45, %c0_46, %c0_47], %74 {strides = array<i32>} : memref<2x32x64xf32, #tpu.memory_space<vmem>>, vector<1x32x64xf32>,
    %75 = vector.extract_strided_slice %70 {offsets = [0, 64], sizes = [32, 64], strides = [1, 1]} : vector<32x128xf32> to vector<32x64xf32>
    %c1_48 = arith.constant 1 : index
    %c0_49 = arith.constant 0 : index
    %c0_50 = arith.constant 0 : index
    %76 = vector.load %arg12[%c1_48, %c0_49, %c0_50] : memref<2x32x64xf32, #tpu.memory_space<vmem>>, vector<1x32x64xf32>
    %77 = vector.shape_cast %76 : vector<1x32x64xf32> to vector<32x64xf32>
    %78 = vector.shape_cast %75 : vector<32x64xf32> to vector<1x32x64xf32>
    tpu.vector_store %arg12[%c1_48, %c0_49, %c0_50], %78 {strides = array<i32>} : memref<2x32x64xf32, #tpu.memory_space<vmem>>, vector<1x32x64xf32>,
    return
  }
  func.func @transform_0(%arg0: i32) -> (i32, i32, i32) {
    %c0_i32 = arith.constant 0 : i32
    %c0_i32_0 = arith.constant 0 : i32
    %c0_i32_1 = arith.constant 0 : i32
    %c0_i32_2 = arith.constant 0 : i32
    return %c0_i32, %c0_i32_0, %c0_i32_1 : i32, i32, i32
  }
  func.func @transform_1(%arg0: i32) -> (i32, i32, i32) {
    %c0_i32 = arith.constant 0 : i32
    %c0_i32_0 = arith.constant 0 : i32
    %c0_i32_1 = arith.constant 0 : i32
    %c0_i32_2 = arith.constant 0 : i32
    return %c0_i32, %c0_i32_0, %c0_i32_1 : i32, i32, i32
  }
  func.func @transform_2(%arg0: i32) -> (i32, i32) {
    %c0_i32 = arith.constant 0 : i32
    %c0_i32_0 = arith.constant 0 : i32
    %c0_i32_1 = arith.constant 0 : i32
    return %c0_i32, %c0_i32_0 : i32, i32
  }
  func.func @transform_3(%arg0: i32) -> (i32, i32) {
    %c0_i32 = arith.constant 0 : i32
    %c0_i32_0 = arith.constant 0 : i32
    %c0_i32_1 = arith.constant 0 : i32
    return %c0_i32, %c0_i32_0 : i32, i32
  }
  func.func @transform_4(%arg0: i32) -> (i32, i32) {
    %c0_i32 = arith.constant 0 : i32
    %c0_i32_0 = arith.constant 0 : i32
    %c0_i32_1 = arith.constant 0 : i32
    return %c0_i32, %c0_i32_0 : i32, i32
  }
  func.func @transform_5(%arg0: i32) -> (i32, i32) {
    %c0_i32 = arith.constant 0 : i32
    %c0_i32_0 = arith.constant 0 : i32
    %c0_i32_1 = arith.constant 0 : i32
    return %c0_i32, %c0_i32_0 : i32, i32
  }
  func.func @transform_6(%arg0: i32) -> (i32, i32) {
    %c0_i32 = arith.constant 0 : i32
    %c0_i32_0 = arith.constant 0 : i32
    %c0_i32_1 = arith.constant 0 : i32
    return %c0_i32, %c0_i32_0 : i32, i32
  }
  func.func @transform_7(%arg0: i32) -> (i32, i32) {
    %c0_i32 = arith.constant 0 : i32
    %c0_i32_0 = arith.constant 0 : i32
    %c0_i32_1 = arith.constant 0 : i32
    return %c0_i32, %c0_i32_0 : i32, i32
  }
  func.func @transform_8(%arg0: i32) -> (i32, i32) {
    %c0_i32 = arith.constant 0 : i32
    %c0_i32_0 = arith.constant 0 : i32
    %c0_i32_1 = arith.constant 0 : i32
    return %c0_i32, %c0_i32_0 : i32, i32
  }
  func.func @transform_9(%arg0: i32) -> (i32, i32) {
    %c0_i32 = arith.constant 0 : i32
    %c0_i32_0 = arith.constant 0 : i32
    %c0_i32_1 = arith.constant 0 : i32
    return %c0_i32, %c0_i32_0 : i32, i32
  }
  func.func @transform_10(%arg0: i32) -> (i32, i32) {
    %c0_i32 = arith.constant 0 : i32
    %c0_i32_0 = arith.constant 0 : i32
    %c0_i32_1 = arith.constant 0 : i32
    return %c0_i32, %c0_i32_0 : i32, i32
  }
  func.func @transform_11(%arg0: i32) -> (i32, i32, i32) {
    %c0_i32 = arith.constant 0 : i32
    %c0_i32_0 = arith.constant 0 : i32
    %c0_i32_1 = arith.constant 0 : i32
    %c0_i32_2 = arith.constant 0 : i32
    return %c0_i32, %c0_i32_0, %c0_i32_1 : i32, i32, i32
  }
  func.func @transform_12(%arg0: i32) -> (i32, i32, i32) {
    %c0_i32 = arith.constant 0 : i32
    %c0_i32_0 = arith.constant 0 : i32
    %c0_i32_1 = arith.constant 0 : i32
    %c0_i32_2 = arith.constant 0 : i32
    return %c0_i32, %c0_i32_0, %c0_i32_1 : i32, i32, i32
  }
}

</mosaic_0001>

<bundles_post_ra>
// kernel: tpu_custom_call.1
= control target key start
LH: loop header
LB: loop body
LE: loop exit
PB: predicated region body
PF: predicated region fallthrough
CT: control target
= control target key end

     0   :  { %19 = vsyncpa [#allocation4], 0  ;;  %s2328_s0 = inlined_call_operand.vmem [shape: f32[2,32,64], index: 0, kind: input, shape index: {}]   ;;  %s2329_s1 = inlined_call_operand.hbm [shape: f32[2,16,64], index: 1, kind: input, shape index: {}]   ;;  %s2330_s2 = inlined_call_operand.hbm [shape: f32[8,16], index: 2, kind: input, shape index: {}]   ;;  %s2331_s3 = inlined_call_operand.vmem [shape: f32[8,1], index: 3, kind: input, shape index: {}]   ;;  %s2332_s4 = inlined_call_operand.hbm [shape: f32[8,32], index: 4, kind: input, shape index: {}]   ;;  %s2333_s5 = inlined_call_operand.vmem [shape: f32[8,1], index: 5, kind: input, shape index: {}]   ;;  %s2334_s6 = inlined_call_operand.vmem [shape: f32[32,32], index: 6, kind: input, shape index: {}]   ;;  %s2335_s7 = inlined_call_operand.vmem [shape: f32[32,1], index: 7, kind: input, shape index: {}]   ;;  %s2336_s8 = inlined_call_operand.hbm [shape: f32[32,32], index: 8, kind: input, shape index: {}]   ;;  %s2337_s9 = inlined_call_operand.vmem [shape: f32[32,1], index: 9, kind: input, shape index: {}]   ;;  %s2338_s10 = inlined_call_operand.<no memory space> [shape: f32[1,1], index: 10, kind: input, shape index: {}]   ;;  %s2339_s11 = inlined_call_operand.hbm [shape: f32[2,32,64], index: 11, kind: output, shape index: {0}]   ;;  %s2340_s12 = inlined_call_operand.hbm [shape: f32[2,64,64], index: 12, kind: output, shape index: {1}]  }
   0x1   :  { %20 = vsyncpa [#allocation7], 0 }
   0x2   :  { %21 = vsyncpa [#allocation10], 0 }
   0x3   :  { %22 = vsyncpa [#allocation5], 0 }
   0x4   :  { %23 = vsyncpa [#allocation13], 0  ;;  %s1857_s21 = smov [#allocation6]   ;;  %s1858_s23 = smov [#allocation3]  }
   0x5   :  { %s44_s22 = sshll.u32 %s1857_s21, 4  ;;  %s31_s24 = sshll.u32 %s1858_s23, 4  ;;  %s45_s22 = int_to_ptr.vmem [resolvable:$true] %s44_s22  ;;  %s32_s24 = int_to_ptr.vmem [resolvable:$true] %s31_s24 }
   0x6   :  { %s1735_s25 = scalar_lea.vmem %s45_s22, 128  ;;  %p1740_p1 = scmp.lt.s32.totalorder %s45_s22, %s45_s22 }
   0x7   :  { %p1736_p0 = scmp.ne.s32.totalorder %s45_s22, %s1735_s25  ;;  %p1741_p2 = scmp.lt.s32.totalorder %s1735_s25, %s1735_s25 }
   0x9   :  { %p1742_p3 = por %p1741_p2, %p1740_p1 }
   0xb   :  { %p1743_p4 = pnand %p1742_p3, %p1736_p0 }
   0xd   :  { %1746 = shalt.err (!%p1743_p4)
}
   0xe   :  { %47 = dma.hbm_to_vmem [thread:$0]  %s2330_s2, 128, %s45_s22, [#allocation7]  }
   0xf   :  { %s1755_s28 = scalar_lea.vmem %s32_s24, 512  ;;  %p1760_p6 = scmp.lt.s32.totalorder %s32_s24, %s32_s24 }
  0x10   :  { %p1756_p5 = scmp.ne.s32.totalorder %s32_s24, %s1755_s28  ;;  %p1761_p7 = scmp.lt.s32.totalorder %s1755_s28, %s1755_s28 }
  0x12   :  { %p1762_p8 = por %p1761_p7, %p1760_p6 }
  0x14   :  { %p1763_p9 = pnand %p1762_p8, %p1756_p5 }
  0x16   :  { %1766 = shalt.err (!%p1763_p9)
}
  0x17   :  { %s1859_s29 = smov 128   ;;  %s1860_s30 = smov 8  }
  0x18   :  { %37 = dma.hbm_to_vmem [thread:$0]  %s2329_s1, 512, %s32_s24, [#allocation4], %s1859_s29, %s1859_s29, %s1860_s30  }
  0x19   :  { %s1861_s15 = smov [#allocation8]   ;;  %s1862_s17 = smov [#allocation9]  }
  0x1a   :  { %s56_s16 = sshll.u32 %s1861_s15, 4  ;;  %s71_s2 = sshll.u32 %s1862_s17, 4  ;;  %s57_s16 = int_to_ptr.vmem [resolvable:$true] %s56_s16  ;;  %s72_s2 = int_to_ptr.vmem [resolvable:$true] %s71_s2 }
  0x1b   :  { %s1775_s18 = scalar_lea.vmem %s57_s16, 128  ;;  %p1780_p11 = scmp.lt.s32.totalorder %s57_s16, %s57_s16 }
  0x1c   :  { %p1776_p10 = scmp.ne.s32.totalorder %s57_s16, %s1775_s18  ;;  %p1781_p12 = scmp.lt.s32.totalorder %s1775_s18, %s1775_s18 }
  0x1e   :  { %p1782_p13 = por %p1781_p12, %p1780_p11 }
  0x20   :  { %p1783_p0 = pnand %p1782_p13, %p1776_p10 }
  0x22   :  { %1786 = shalt.err (!%p1783_p0)
}
  0x23   :  { %59 = dma.hbm_to_vmem [thread:$0]  %s2332_s4, 128, %s57_s16, [#allocation7]  }
  0x24   :  { %s1795_s21 = scalar_lea.vmem %s72_s2, 512  ;;  %p1800_p2 = scmp.lt.s32.totalorder %s72_s2, %s72_s2 }
  0x25   :  { %p1796_p1 = scmp.ne.s32.totalorder %s72_s2, %s1795_s21  ;;  %p1801_p3 = scmp.lt.s32.totalorder %s1795_s21, %s1795_s21 }
  0x27   :  { %p1802_p4 = por %p1801_p3, %p1800_p2 }
  0x29   :  { %p1803_p5 = pnand %p1802_p4, %p1796_p1 }
  0x2b   :  { %1806 = shalt.err (!%p1803_p5)
}
  0x2c   :  { %77 = dma.hbm_to_vmem [thread:$0]  %s2336_s8, 512, %s72_s2, [#allocation10], %s1859_s29, %s1859_s29, %s1860_s30  }
  0x2d   :  { %1847 = dma.done.wait [#allocation4], 512  }
  0x2e   :  { %1848 = vsyncadd [#allocation4], 4294966784 }
  0x2f   :  { %1849 = dma.done.wait [#allocation7], 256  }
  0x30   :  { %1850 = vsyncadd [#allocation7], 4294967040 }
  0x31   :  { %1851 = dma.done.wait [#allocation10], 512  }
  0x32   :  { %1852 = vsyncadd [#allocation10], 4294966784  ;;  %v1863_v0 = vmov 0.0   ;;  %vm1864_vm0 = vmmov 0   ;;  %v1865_v1 = vmov 0   ;;  %v128_v2 = vld [vmem:[#allocation3 + $0x18] sm:$0xff] }
  0x33   :  { %1531 = vmatprep.subr.mxu0 %v1863_v0  ;;  %1535 = vmatprep.mubr.msk.f32.mxu0 %vm1864_vm0, %v1863_v0  ;;  %v1414_v3 = vld [vmem:[%s2328_s0 + $0x38] sm:$0xff]  ;;  %s1866_s8 = smov 64   ;;  %v127_v4 = vld [vmem:[#allocation3 + $0x10] sm:$0xff]  ;;  %v1412_v6 = vld [vmem:[%s2328_s0 + $0x28] sm:$0xff]  ;;  %vm119_vm1 = vcmask 523264   ;;  %vm146_vm2 = vcmask 130048  }
  0x34   :  { %1661 = vset.pattern.permute.xlu0 %v1865_v1  ;;  %1538 = vmatprep.subr.mxu1 %v1863_v0  ;;  %v1413_v5 = vld [vmem:[%s2328_s0 + $0x30] sm:$0xff]  ;;  %v1411_v7 = vld [vmem:[%s2328_s0 + $0x20] sm:$0xff]  ;;  %v125_v10 = vld [vmem:[#allocation3 + $0x8] sm:$0xff]  ;;  %vm227_vm3 = vcmask 261120   ;;  %vm458_vm4 = vcmask 64512  }
  0x35   :  { %1546 = vmatprep.mubr.msk.f32.mxu1 %vm1864_vm0, %v1863_v0  ;;  %1662 = vset.pattern.permute.xlu1 %v1865_v1  ;;  %v140_v8 = vld [vmem:[%s2331_s3] sm:$0xff]  ;;  %v97_v11 = vld [vmem:[%s2328_s0 + $0x18] sm:$0xff]  ;;  %v96_v17 = vld [vmem:[%s2328_s0 + $0x10] sm:$0xff] }
  0x36   :  { %133 = vrot.lane.b32.xlu0 %v128_v2, %s1866_s8  ;;  %113 = vrot.lane.b32.xlu1 %v1414_v3, %s1866_s8  ;;  %v221_v9 = vld [vmem:[%s2333_s5] sm:$0xff]  ;;  %v95_v23 = vld [vmem:[%s2328_s0 + $0x8] sm:$0xff] }
  0x37   :  { %v124_v16 = vld [vmem:[#allocation3] sm:$0xff]  ;;  %v220_v29 = vld [vmem:[#allocation8] sm:$0xff]  ;;  %v303_v58 = vld [vmem:[%s2334_s6 + $0x10] sm:$0xff] }
  0x38   :  { %v139_v19 = vld [vmem:[#allocation6] sm:$0xff]  ;;  %v302_v55 = vld [vmem:[%s2334_s6 + $0x8] sm:$0xff]  ;;  %v304_v59 = vld [vmem:[%s2334_s6 + $0x18] sm:$0xff] }
  0x39   :  { %v94_v24 = vld [vmem:[%s2328_s0] sm:$0xff] }
  0x3a   :  { %131 = vrot.lane.b32.xlu0 %v127_v4, %s1866_s8  ;;  %111 = vrot.lane.b32.xlu1 %v1413_v5, %s1866_s8  ;;  %v301_v53 = vld [vmem:[%s2334_s6] sm:$0xff] }
  0x3e   :  { %109 = vrot.lane.b32.xlu0 %v1412_v6, %s1866_s8  ;;  %107 = vrot.lane.b32.xlu1 %v1411_v7, %s1866_s8 }
  0x42   :  { %143 = vperm.xlu0 %1661, %v140_v8   ;;  %224 = vperm.xlu1 %1662, %v221_v9  }
  0xa8   :  { %v134_v12 = vpop.permute.xlu0 %133  ;;  %v114_v13 = vpop.permute.xlu1 %113 }
  0xa9   :  { %v138_v14 = vsel %vm119_vm1, %v125_v10, %v134_v12  ;;  %v1981_v15 = vsel %vm119_vm1, %v97_v11, %v114_v13 }
  0xaa   :  { %1532 = vmatpush3.msra.mxu0 %v138_v14  ;;  %1539 = vmatpush3.msra.mxu1 %v1981_v15 }
  0xab   :  { %1533 = vmatprep.subr.mxu0 %v1863_v0  ;;  %1540 = vmatprep.subr.mxu1 %v1863_v0 }
  0xac   :  { %v132_v18 = vpop.permute.xlu0 %131  ;;  %v112_v20 = vpop.permute.xlu1 %111 }
  0xad   :  { %v137_v21 = vsel %vm119_vm1, %v124_v16, %v132_v18  ;;  %v1989_v22 = vsel %vm119_vm1, %v96_v17, %v112_v20 }
  0xae   :  { %1534 = vmatpush3.msra.mxu0 %v137_v21  ;;  %1541 = vmatpush3.msra.mxu1 %v1989_v22 }
  0xaf   :  { %1536 = vmatmul.mubr.msk.f32.vlgmr.msra.gmra.mxu0 %vm146_vm2, %v139_v19  ;;  %1549 = vmatprep.subr.mxu0 %v1981_v15 }
  0xb0   :  { %1550 = vmatpush3.msra.mxu0 %v1981_v15  ;;  %v110_v25 = vpop.permute.xlu0 %109  ;;  %1542 = vmatprep.subr.mxu1 %v1863_v0  ;;  %v108_v26 = vpop.permute.xlu1 %107 }
  0xb1   :  { %v2001_v27 = vsel %vm119_vm1, %v95_v23, %v110_v25  ;;  %1551 = vmatprep.subr.mxu0 %v1989_v22  ;;  %v2005_v28 = vsel %vm119_vm1, %v94_v24, %v108_v26  ;;  %1557 = vmatprep.mubr.msk.f32.mxu0 %vm227_vm3, %v301_v53 }
  0xb2   :  { %1543 = vmatpush3.msra.mxu1 %v2001_v27  ;;  %1552 = vmatpush3.msra.mxu0 %v1989_v22 }
  0xb3   :  { %1544 = vmatprep.subr.mxu1 %v1863_v0  ;;  %1553 = vmatprep.subr.mxu0 %v2001_v27 }
  0xb4   :  { %1545 = vmatpush3.msra.mxu1 %v2005_v28  ;;  %1554 = vmatpush3.msra.mxu0 %v2001_v27 }
  0xb5   :  { %1547 = vmatmul.mubr.msk.f32.vlgmr.msra.gmra.mxu1 %vm227_vm3, %v220_v29  ;;  %1555 = vmatprep.subr.mxu0 %v2005_v28 }
  0xb6   :  { %1556 = vmatpush3.msra.mxu0 %v2005_v28 }
  0xb7   :  { %1558 = vmatmul.mubr.msk.f32.vlgmr.msra.gmra.mxu0 %vm227_vm3, %v302_v55 }
  0xb8   :  { %1560 = vmatprep.mubr.msk.f32.mxu0 %vm227_vm3, %v303_v58 }
  0xbb   :  { %1561 = vmatmul.mubr.msk.f32.gmra.mxu0 %vm227_vm3, %v304_v59 }
  0xbd   :  { %v144_v30 = vpop.permute.xlu0 %143  ;;  %v225_v34 = vpop.permute.xlu1 %224 }
 0x16f   :  { %v216_v31 = vpop.f32.mrf.mxu0 }
 0x170   :  { %v217_v32 = vadd.f32 %v216_v31, %v144_v30  ;;  %v305_v31 = vld [vmem:[%s2335_s7] sm:$0xff] }
 0x171   :  { %v1537_v33 = vpop.f32.mrf.mxu0 }
 0x172   :  { %806 = vrot.lane.b32.xlu1 %v217_v32, %s1866_s8  ;;  %v307_v33 = vld [vmem:[%s2335_s7 + $0x10] sm:$0xff] }
 0x175   :  { %v297_v35 = vpop.f32.mrf.mxu1 }
 0x176   :  { %v298_v36 = vadd.f32 %v297_v35, %v225_v34  ;;  %v308_v34 = vld [vmem:[%s2335_s7 + $0x18] sm:$0xff] }
 0x177   :  { %v1548_v37 = vpop.f32.mrf.mxu1 }
 0x178   :  { %842 = vrot.lane.b32.xlu0 %v298_v36, %s1866_s8  ;;  %1563 = vmatprep.subr.mxu1 %v298_v36 }
 0x179   :  { %1564 = vmatpush3.msra.mxu1 %v298_v36 }
 0x19b   :  { %426 = vxpose.xlu1.b32.start.end [1/1] (short) (narrow) %v217_v32, 64  ;;  %v306_v32 = vld [vmem:[%s2335_s7 + $0x8] sm:$0xff] }
 0x1e4   :  { %v807_v38 = vpop.permute.xlu1 %806 }
 0x1e5   :  { %809 = vxpose.xlu0.b32.start.end [1/1] (short) (narrow) %v807_v38, 64 }
 0x1ea   :  { %v843_v39 = vpop.permute.xlu0 %842 }
 0x1eb   :  { %1599 = vmatprep.subr.mxu1 %v843_v39 }
 0x217   :  { %v442_v40 = vpop.trf.xlu1 }
 0x218   :  { %1565 = vmatprep.mubr.msk.f32.mxu1 %vm458_vm4, %v442_v40 }
 0x21b   :  { %v443_v41 = vpop.trf.xlu1 }
 0x21c   :  { %1566 = vmatmul.mubr.msk.f32.vlgmr.msra.gmra.mxu1 %vm458_vm4, %v443_v41 }
 0x21d   :  { %1600 = vmatpush3.msra.mxu1 %v843_v39 }
 0x21f   :  { %v444_v42 = vpop.trf.xlu1 }
 0x220   :  { %1568 = vmatprep.mubr.msk.f32.mxu1 %vm458_vm4, %v444_v42 }
 0x223   :  { %v445_v43 = vpop.trf.xlu1 }
 0x224   :  { %1569 = vmatmul.mubr.msk.f32.gmra.mxu1 %vm458_vm4, %v445_v43 }
 0x227   :  { %v446_v44 = vpop.trf.xlu1 }
 0x228   :  { %1571 = vmatprep.mubr.msk.f32.mxu1 %vm458_vm4, %v446_v44 }
 0x22b   :  { %v447_v45 = vpop.trf.xlu1 }
 0x22c   :  { %1572 = vmatmul.mubr.msk.f32.gmra.mxu1 %vm458_vm4, %v447_v45 }
 0x22f   :  { %v448_v46 = vpop.trf.xlu1 }
 0x230   :  { %1574 = vmatprep.mubr.msk.f32.mxu1 %vm458_vm4, %v448_v46 }
 0x233   :  { %v449_v47 = vpop.trf.xlu1 }
 0x234   :  { %1575 = vmatmul.mubr.msk.f32.gmra.mxu1 %vm458_vm4, %v449_v47 }
 0x261   :  { %v825_v48 = vpop.trf.xlu0 }
 0x262   :  { %1601 = vmatprep.mubr.msk.f32.mxu1 %vm458_vm4, %v825_v48 }
 0x265   :  { %v826_v49 = vpop.trf.xlu0 }
 0x266   :  { %1602 = vmatmul.mubr.msk.f32.vlgmr.msra.gmra.mxu1 %vm458_vm4, %v826_v49 }
 0x269   :  { %v827_v50 = vpop.trf.xlu0 }
 0x26a   :  { %1604 = vmatprep.mubr.msk.f32.mxu1 %vm458_vm4, %v827_v50 }
 0x26d   :  { %v828_v51 = vpop.trf.xlu0 }
 0x26e   :  { %1605 = vmatmul.mubr.msk.f32.gmra.mxu1 %vm458_vm4, %v828_v51 }
 0x271   :  { %v829_v52 = vpop.trf.xlu0 }
 0x272   :  { %1607 = vmatprep.mubr.msk.f32.mxu1 %vm458_vm4, %v829_v52 }
 0x275   :  { %v830_v54 = vpop.trf.xlu0 }
 0x276   :  { %1608 = vmatmul.mubr.msk.f32.gmra.mxu1 %vm458_vm4, %v830_v54 }
 0x279   :  { %v831_v56 = vpop.trf.xlu0 }
 0x27a   :  { %1610 = vmatprep.mubr.msk.f32.mxu1 %vm458_vm4, %v831_v56 }
 0x27d   :  { %v832_v57 = vpop.trf.xlu0 }
 0x27e   :  { %1611 = vmatmul.mubr.msk.f32.gmra.mxu1 %vm458_vm4, %v832_v57 }
 0x2dc   :  { %v2049_v60 = vpop.f32.mrf.mxu1 }
 0x2dd   :  { %v591_v29 = vsel %vm119_vm1, %v2049_v60, -inf }
 0x2de   :  { %v2051_v61 = vpop.f32.mrf.mxu1 }
 0x2df   :  { %v588_v35 = vsel %vm119_vm1, %v2051_v61, -inf }
 0x2e4   :  { %v2053_v62 = vpop.f32.mrf.mxu1 }
 0x2e5   :  { %v597_v25 = vsel %vm119_vm1, %v2053_v62, -inf }
 0x2e6   :  { %v2055_v63 = vpop.f32.mrf.mxu1 }
 0x2e7   :  { %v594_v30 = vsel %vm119_vm1, %v2055_v63, -inf }
 0x2ec   :  { %v2057_v0 = vpop.f32.mrf.mxu1 }
 0x2ed   :  { %v603_v23 = vsel %vm119_vm1, %v2057_v0, -inf }
 0x2ee   :  { %v2059_v1 = vpop.f32.mrf.mxu1 }
 0x2ef   :  { %v600_v26 = vsel %vm119_vm1, %v2059_v1, -inf }
 0x2f4   :  { %v2061_v2 = vpop.f32.mrf.mxu1 }
 0x2f5   :  { %v609_v20 = vsel %vm119_vm1, %v2061_v2, -inf }
 0x2f6   :  { %v2063_v3 = vpop.f32.mrf.mxu1 }
 0x2f7   :  { %v606_v24 = vsel %vm119_vm1, %v2063_v3, -inf }
 0x326   :  { %v2065_v4 = vpop.f32.mrf.mxu1 }
 0x327   :  { %v977_v18 = vsel %vm119_vm1, %v2065_v4, -inf }
 0x328   :  { %v2067_v5 = vpop.f32.mrf.mxu1 }
 0x329   :  { %v974_v21 = vsel %vm119_vm1, %v2067_v5, -inf }
 0x32e   :  { %v1606_v6 = vpop.f32.mrf.mxu1 }
 0x32f   :  { %v983_v16 = vsel %vm119_vm1, %v1606_v6, -inf }
 0x330   :  { %v2069_v7 = vpop.f32.mrf.mxu1 }
 0x331   :  { %v980_v19 = vsel %vm119_vm1, %v2069_v7, -inf }
 0x336   :  { %v1609_v8 = vpop.f32.mrf.mxu1 }
 0x337   :  { %v989_v9 = vsel %vm119_vm1, %v1609_v8, -inf }
 0x338   :  { %990 = vmax.xlane.f32.xlu0 %v989_v9  ;;  %v955_v10 = vpop.f32.mrf.mxu1 }
 0x339   :  { %v986_v17 = vsel %vm119_vm1, %v955_v10, -inf }
 0x33e   :  { %v1612_v11 = vpop.f32.mrf.mxu1 }
 0x33f   :  { %v995_v12 = vsel %vm119_vm1, %v1612_v11, -inf }
 0x340   :  { %996 = vmax.xlane.f32.xlu0 %v995_v12  ;;  %v965_v13 = vpop.f32.mrf.mxu1 }
 0x341   :  { %v992_v14 = vsel %vm119_vm1, %v965_v13, -inf }
 0x342   :  { %993 = vmax.xlane.f32.xlu1 %v992_v14 }
 0x344   :  { %984 = vmax.xlane.f32.xlu0 %v983_v16 }
 0x346   :  { %987 = vmax.xlane.f32.xlu1 %v986_v17 }
 0x348   :  { %978 = vmax.xlane.f32.xlu0 %v977_v18 }
 0x34a   :  { %981 = vmax.xlane.f32.xlu1 %v980_v19 }
 0x34c   :  { %610 = vmax.xlane.f32.xlu0 %v609_v20 }
 0x34e   :  { %975 = vmax.xlane.f32.xlu1 %v974_v21 }
 0x350   :  { %604 = vmax.xlane.f32.xlu0 %v603_v23 }
 0x352   :  { %607 = vmax.xlane.f32.xlu1 %v606_v24 }
 0x354   :  { %598 = vmax.xlane.f32.xlu0 %v597_v25 }
 0x356   :  { %601 = vmax.xlane.f32.xlu1 %v600_v26 }
 0x358   :  { %592 = vmax.xlane.f32.xlu0 %v591_v29 }
 0x35a   :  { %595 = vmax.xlane.f32.xlu1 %v594_v30 }
 0x36b   :  { %311 = vperm.xlu1 %1662, %v305_v31  }
 0x36e   :  { %316 = vperm.xlu0 %1661, %v306_v32  }
 0x372   :  { %321 = vperm.xlu0 %1661, %v307_v33  }
 0x376   :  { %326 = vperm.xlu0 %1661, %v308_v34  }
 0x38f   :  { %589 = vmax.xlane.f32.xlu1 %v588_v35 }
 0x3c1   :  { %v991_v36 = vpop.xlane.xlu0 %990 }
 0x3c2   :  { %v1003_v37 = vsub.f32 %v1609_v8, %v991_v36 }
 0x3c4   :  { %v1016_v38 = vmul.f32 1.442695, %v1003_v37 }
 0x3c6   :  { %1663 = vpow2.f32 %v1016_v38 }
 0x3c9   :  { %v997_v39 = vpop.xlane.xlu0 %996 }
 0x3ca   :  { %v1005_v40 = vsub.f32 %v1612_v11, %v997_v39 }
 0x3cb   :  { %v994_v41 = vpop.xlane.xlu1 %993 }
 0x3cc   :  { %v1004_v43 = vsub.f32 %v965_v13, %v994_v41  ;;  %v1020_v45 = vmul.f32 1.442695, %v1005_v40 }
 0x3cd   :  { %v985_v42 = vpop.xlane.xlu0 %984 }
 0x3ce   :  { %v1001_v44 = vsub.f32 %v1606_v6, %v985_v42  ;;  %v1018_v50 = vmul.f32 1.442695, %v1004_v43 }
 0x3cf   :  { %v988_v46 = vpop.xlane.xlu1 %987 }
 0x3d0   :  { %v1012_v47 = vmul.f32 1.442695, %v1001_v44  ;;  %v1002_v48 = vsub.f32 %v955_v10, %v988_v46 }
 0x3d1   :  { %v979_v49 = vpop.xlane.xlu0 %978 }
 0x3d2   :  { %1665 = vpow2.f32 %v1012_v47  ;;  %v1014_v51 = vmul.f32 1.442695, %v1002_v48  ;;  %v999_v52 = vsub.f32 %v2065_v4, %v979_v49 }
 0x3d3   :  { %v2111_v53 = vpop.eup %1663  ;;  %1667 = vpow2.f32 %v1020_v45  ;;  %v982_v54 = vpop.xlane.xlu1 %981 }
 0x3d4   :  { %1669 = vpow2.f32 %v1014_v51  ;;  %v1008_v55 = vmul.f32 1.442695, %v999_v52  ;;  %v1000_v56 = vsub.f32 %v2069_v7, %v982_v54  ;;  %v1037_v57 = vsel %vm119_vm1, %v2111_v53, 0.0 }
 0x3d5   :  { %v611_v58 = vpop.xlane.xlu0 %610  ;;  %1038 = vadd.xlane.f32.xlu1 %v1037_v57  ;;  %1671 = vpow2.f32 %v1018_v50 }
 0x3d6   :  { %v1010_v59 = vmul.f32 1.442695, %v1000_v56  ;;  %v619_v6 = vsub.f32 %v2061_v2, %v611_v58  ;;  %1673 = vpow2.f32 %v1008_v55  ;;  %v1559_v2 = vpop.f32.mrf.mxu0 }
 0x3d7   :  { %v976_v8 = vpop.xlane.xlu1 %975 }
 0x3d8   :  { %v634_v4 = vmul.f32 1.442695, %v619_v6  ;;  %v998_v9 = vsub.f32 %v2067_v5, %v976_v8  ;;  %1675 = vpow2.f32 %v1010_v59  ;;  %v407_v21 = vpop.f32.mrf.mxu0 }
 0x3d9   :  { %v605_v31 = vpop.xlane.xlu0 %604 }
 0x3da   :  { %v1006_v10 = vmul.f32 1.442695, %v998_v9  ;;  %1677 = vpow2.f32 %v634_v4  ;;  %v1562_v39 = vpop.f32.mrf.mxu0  ;;  %v617_v49 = vsub.f32 %v2057_v0, %v605_v31 }
 0x3db   :  { %v608_v11 = vpop.xlane.xlu1 %607 }
 0x3dc   :  { %1679 = vpow2.f32 %v1006_v10  ;;  %v417_v42 = vpop.f32.mrf.mxu0  ;;  %v618_v46 = vsub.f32 %v2063_v3, %v608_v11  ;;  %v630_v52 = vmul.f32 1.442695, %v617_v49 }
 0x3dd   :  { %v599_v36 = vpop.xlane.xlu0 %598 }
 0x3de   :  { %v632_v47 = vmul.f32 1.442695, %v618_v46  ;;  %v615_v50 = vsub.f32 %v2053_v62, %v599_v36 }
 0x3df   :  { %v2118_v7 = vpop.eup %1665  ;;  %v602_v12 = vpop.xlane.xlu1 %601 }
 0x3e0   :  { %v2120_v13 = vpop.eup %1667  ;;  %v1031_v14 = vsel %vm119_vm1, %v2118_v7, 0.0  ;;  %v616_v48 = vsub.f32 %v2059_v1, %v602_v12  ;;  %1681 = vpow2.f32 %v632_v47  ;;  %v626_v55 = vmul.f32 1.442695, %v615_v50 }
 0x3e1   :  { %v2124_v16 = vpop.eup %1669  ;;  %1032 = vadd.xlane.f32.xlu0 %v1031_v14  ;;  %v1043_v19 = vsel %vm119_vm1, %v2120_v13, 0.0  ;;  %v593_v37 = vpop.xlane.xlu0 %592 }
 0x3e2   :  { %v1034_v5 = vsel %vm119_vm1, %v2124_v16, 0.0  ;;  %v2128_v17 = vpop.eup %1671  ;;  %v628_v51 = vmul.f32 1.442695, %v616_v48  ;;  %v613_v54 = vsub.f32 %v2049_v60, %v593_v37 }
 0x3e3   :  { %1035 = vadd.xlane.f32.xlu1 %v1034_v5  ;;  %v596_v18 = vpop.xlane.xlu1 %595  ;;  %v2132_v20 = vpop.eup %1673  ;;  %v1040_v23 = vsel %vm119_vm1, %v2128_v17, 0.0 }
 0x3e4   :  { %v1025_v29 = vsel %vm119_vm1, %v2132_v20, 0.0  ;;  %1683 = vpow2.f32 %v628_v51  ;;  %v614_v56 = vsub.f32 %v2055_v63, %v596_v18  ;;  %v622_v57 = vmul.f32 1.442695, %v613_v54 }
 0x3e5   :  { %1044 = vadd.xlane.f32.xlu0 %v1043_v19  ;;  %v2136_v24 = vpop.eup %1675  ;;  %1685 = vpow2.f32 %v630_v52 }
 0x3e6   :  { %v1028_v32 = vsel %vm119_vm1, %v2136_v24, 0.0  ;;  %1687 = vpow2.f32 %v626_v55  ;;  %v624_v58 = vmul.f32 1.442695, %v614_v56 }
 0x3e7   :  { %1041 = vadd.xlane.f32.xlu1 %v1040_v23  ;;  %v312_v25 = vpop.permute.xlu1 %311  ;;  %v2140_v30 = vpop.eup %1677  ;;  %1689 = vpow2.f32 %v622_v57 }
 0x3e8   :  { %v408_v26 = vadd.f32 %v407_v21, %v312_v25  ;;  %v657_v34 = vsel %vm119_vm1, %v2140_v30, 0.0  ;;  %1691 = vpow2.f32 %v624_v58 }
 0x3e9   :  { %1026 = vadd.xlane.f32.xlu0 %v1025_v29  ;;  %v2145_v33 = vpop.eup %1679  ;;  %v317_v38 = vpop.permute.xlu0 %316 }
 0x3ea   :  { %1593 = vmatprep.mubr.msk.f32.mxu0 %vm119_vm1, %v408_v26  ;;  %v1022_v35 = vsel %vm119_vm1, %v2145_v33, 0.0  ;;  %v2152_v41 = vadd.f32 %v1559_v2, %v317_v38 }
 0x3eb   :  { %1029 = vadd.xlane.f32.xlu1 %v1028_v32 }
 0x3ed   :  { %658 = vadd.xlane.f32.xlu0 %v657_v34  ;;  %v322_v40 = vpop.permute.xlu0 %321  ;;  %v2171_v59 = vpop.eup %1681 }
 0x3ee   :  { %v2156_v43 = vadd.f32 %v417_v42, %v322_v40  ;;  %v654_v60 = vsel %vm119_vm1, %v2171_v59, 0.0 }
 0x3ef   :  { %1023 = vadd.xlane.f32.xlu1 %v1022_v35 }
 0x3f1   :  { %v327_v44 = vpop.permute.xlu0 %326  ;;  %v2175_v62 = vpop.eup %1683 }
 0x3f2   :  { %v2160_v45 = vadd.f32 %v1562_v39, %v327_v44  ;;  %v2177_v63 = vpop.eup %1685  ;;  %v648_v6 = vsel %vm119_vm1, %v2175_v62, 0.0 }
 0x3f3   :  { %v2181_v8 = vpop.eup %1687 }
 0x3f4   :  { %v2185_v4 = vpop.eup %1689  ;;  %v645_v9 = vsel %vm119_vm1, %v2181_v8, 0.0 }
 0x3f5   :  { %v2189_v10 = vpop.eup %1691  ;;  %v639_v11 = vsel %vm119_vm1, %v2185_v4, 0.0 }
 0x3f6   :  { %v642_v12 = vsel %vm119_vm1, %v2189_v10, 0.0 }
 0x400   :  { %1071 = vrot.lane.b32.xlu1 %v408_v26, %s1866_s8 }
 0x403   :  { %1073 = vrot.lane.b32.xlu0 %v2152_v41, %s1866_s8 }
 0x407   :  { %1075 = vrot.lane.b32.xlu0 %v2156_v43, %s1866_s8 }
 0x40b   :  { %1077 = vrot.lane.b32.xlu0 %v2160_v45, %s1866_s8 }
 0x418   :  { %v590_v3 = vpop.xlane.xlu1 %589 }
 0x419   :  { %v612_v1 = vsub.f32 %v2051_v61, %v590_v3  ;;  %v651_v61 = vsel %vm119_vm1, %v2177_v63, 0.0 }
 0x41b   :  { %v620_v0 = vmul.f32 1.442695, %v612_v1 }
 0x41d   :  { %1693 = vpow2.f32 %v620_v0 }
 0x424   :  { %655 = vadd.xlane.f32.xlu1 %v654_v60 }
 0x428   :  { %649 = vadd.xlane.f32.xlu1 %v648_v6 }
 0x42a   :  { %652 = vadd.xlane.f32.xlu0 %v651_v61  ;;  %v2195_v14 = vpop.eup %1693 }
 0x42b   :  { %v636_v2 = vsel %vm119_vm1, %v2195_v14, 0.0 }
 0x42c   :  { %646 = vadd.xlane.f32.xlu1 %v645_v9 }
 0x42e   :  { %640 = vadd.xlane.f32.xlu0 %v639_v11 }
 0x430   :  { %643 = vadd.xlane.f32.xlu1 %v642_v12 }
 0x434   :  { %637 = vadd.xlane.f32.xlu1 %v636_v2 }
 0x45e   :  { %v1039_v5 = vpop.xlane.xlu1 %1038 }
 0x45f   :  { %1695 = vrcp.f32 %v1039_v5  ;;  %v1222_v5 = vld [vmem:[%s2337_s9 + $0x10] sm:$0xff] }
 0x46a   :  { %v1033_v18 = vpop.xlane.xlu0 %1032 }
 0x46b   :  { %1697 = vrcp.f32 %v1033_v18 }
 0x46c   :  { %v1696_v19 = vpop.eup %1695  ;;  %v1036_v21 = vpop.xlane.xlu1 %1035 }
 0x46d   :  { %1699 = vrcp.f32 %v1036_v21  ;;  %v1059_v23 = vmul.f32 %v1696_v19, %v2111_v53 }
 0x46e   :  { %v1045_v25 = vpop.xlane.xlu0 %1044 }
 0x46f   :  { %1701 = vrcp.f32 %v1045_v25  ;;  %1068 = vst.msk [vmem:[#allocation12 + $0x68] sm:$0xff] %vm119_vm1, %v1059_v23 }
 0x470   :  { %v1042_v26 = vpop.xlane.xlu1 %1041 }
 0x471   :  { %1703 = vrcp.f32 %v1042_v26 }
 0x472   :  { %v1027_v29 = vpop.xlane.xlu0 %1026 }
 0x473   :  { %1705 = vrcp.f32 %v1027_v29 }
 0x474   :  { %v1030_v31 = vpop.xlane.xlu1 %1029 }
 0x475   :  { %1707 = vrcp.f32 %v1030_v31 }
 0x476   :  { %v659_v32 = vpop.xlane.xlu0 %658 }
 0x477   :  { %1709 = vrcp.f32 %v659_v32 }
 0x478   :  { %v1698_v34 = vpop.eup %1697  ;;  %v1024_v35 = vpop.xlane.xlu1 %1023 }
 0x479   :  { %1711 = vrcp.f32 %v1024_v35  ;;  %v1057_v36 = vmul.f32 %v1698_v34, %v2118_v7 }
 0x47a   :  { %v1700_v37 = vpop.eup %1699 }
 0x47b   :  { %v1058_v53 = vmul.f32 %v1700_v37, %v2124_v16  ;;  %1066 = vst.msk [vmem:[#allocation12 + $0x58] sm:$0xff] %vm119_vm1, %v1057_v36  ;;  %v1217_v37 = vld [vmem:[#allocation9 + $0x8] sm:$0xff] }
 0x47c   :  { %v1702_v38 = vpop.eup %1701  ;;  %v1072_v39 = vpop.permute.xlu1 %1071 }
 0x47d   :  { %1629 = vmatprep.mubr.msk.f32.mxu1 %vm119_vm1, %v1072_v39  ;;  %v1061_v40 = vmul.f32 %v1702_v38, %v2120_v13  ;;  %1067 = vst.msk [vmem:[#allocation12 + $0x60] sm:$0xff] %vm119_vm1, %v1058_v53  ;;  %v1219_v38 = vld [vmem:[#allocation9 + $0x18] sm:$0xff] }
 0x47e   :  { %v1704_v42 = vpop.eup %1703 }
 0x47f   :  { %1070 = vst.msk [vmem:[#allocation12 + $0x78] sm:$0xff] %vm119_vm1, %v1061_v40  ;;  %1613 = vmatprep.subr.msk.mxu1 %vm119_vm1, %v1061_v40  ;;  %v1060_v7 = vmul.f32 %v1704_v42, %v2128_v17 }
 0x480   :  { %v1706_v44 = vpop.eup %1705  ;;  %1614 = vmatpush3.xpose.msk.msra.mxu1 %vm119_vm1, %v1061_v40 }
 0x481   :  { %1069 = vst.msk [vmem:[#allocation12 + $0x70] sm:$0xff] %vm119_vm1, %v1060_v7  ;;  %1615 = vmatprep.subr.msk.mxu1 %vm119_vm1, %v1060_v7  ;;  %v1055_v16 = vmul.f32 %v1706_v44, %v2132_v20 }
 0x482   :  { %v1708_v46 = vpop.eup %1707 }
 0x483   :  { %v1056_v13 = vmul.f32 %v1708_v46, %v2136_v24  ;;  %1064 = vst.msk [vmem:[#allocation12 + $0x48] sm:$0xff] %vm119_vm1, %v1055_v16  ;;  %v1074_v24 = vpop.permute.xlu0 %1073 }
 0x484   :  { %v1710_v47 = vpop.eup %1709  ;;  %1616 = vmatpush3.xpose.msk.msra.mxu1 %vm119_vm1, %v1060_v7  ;;  %v1342_v7 = vstv %s2338_s10 }
 0x485   :  { %1617 = vmatprep.subr.msk.mxu1 %vm119_vm1, %v1059_v23  ;;  %v675_v17 = vmul.f32 %v1710_v47, %v2140_v30  ;;  %1065 = vst.msk [vmem:[#allocation12 + $0x50] sm:$0xff] %vm119_vm1, %v1056_v13 }
 0x486   :  { %v1712_v48 = vpop.eup %1711 }
 0x487   :  { %683 = vst.msk [vmem:[#allocation12 + $0x38] sm:$0xff] %vm119_vm1, %v675_v17  ;;  %1577 = vmatprep.subr.msk.mxu0 %vm119_vm1, %v675_v17  ;;  %v1054_v20 = vmul.f32 %v1712_v48, %v2145_v33  ;;  %v1076_v30 = vpop.permute.xlu0 %1075 }
 0x488   :  { %1578 = vmatpush3.xpose.msk.msra.mxu0 %vm119_vm1, %v675_v17  ;;  %1618 = vmatpush3.xpose.msk.msra.mxu1 %vm119_vm1, %v1059_v23 }
 0x489   :  { %1619 = vmatprep.subr.msk.mxu1 %vm119_vm1, %v1058_v53  ;;  %1063 = vst.msk [vmem:[#allocation12 + $0x40] sm:$0xff] %vm119_vm1, %v1054_v20 }
 0x48b   :  { %v1078_v33 = vpop.permute.xlu0 %1077 }
 0x48c   :  { %1620 = vmatpush3.xpose.msk.msra.mxu1 %vm119_vm1, %v1058_v53  ;;  %v1218_v53 = vld [vmem:[#allocation9 + $0x10] sm:$0xff] }
 0x48d   :  { %1621 = vmatprep.subr.msk.mxu1 %vm119_vm1, %v1057_v36 }
 0x490   :  { %1622 = vmatpush3.xpose.msk.msra.mxu1 %vm119_vm1, %v1057_v36 }
 0x491   :  { %1623 = vmatprep.subr.msk.mxu1 %vm119_vm1, %v1056_v13 }
 0x494   :  { %1624 = vmatpush3.xpose.msk.msra.mxu1 %vm119_vm1, %v1056_v13 }
 0x495   :  { %1625 = vmatprep.subr.msk.mxu1 %vm119_vm1, %v1055_v16 }
 0x498   :  { %1626 = vmatpush3.xpose.msk.msra.mxu1 %vm119_vm1, %v1055_v16 }
 0x499   :  { %1627 = vmatprep.subr.msk.mxu1 %vm119_vm1, %v1054_v20 }
 0x49c   :  { %1628 = vmatpush3.xpose.msk.msra.mxu1 %vm119_vm1, %v1054_v20 }
 0x49f   :  { %1630 = vmatmul.mubr.msk.f32.vlgmr.msra.gmra.mxu1 %vm119_vm1, %v1074_v24 }
 0x4a0   :  { %1632 = vmatprep.mubr.msk.f32.mxu1 %vm119_vm1, %v1076_v30 }
 0x4a3   :  { %1633 = vmatmul.mubr.msk.f32.gmra.mxu1 %vm119_vm1, %v1078_v33 }
 0x4ad   :  { %v656_v49 = vpop.xlane.xlu1 %655 }
 0x4ae   :  { %1713 = vrcp.f32 %v656_v49 }
 0x4b1   :  { %v650_v50 = vpop.xlane.xlu1 %649 }
 0x4b2   :  { %1715 = vrcp.f32 %v650_v50 }
 0x4b3   :  { %v653_v51 = vpop.xlane.xlu0 %652 }
 0x4b4   :  { %1717 = vrcp.f32 %v653_v51 }
 0x4b5   :  { %v647_v52 = vpop.xlane.xlu1 %646 }
 0x4b6   :  { %1719 = vrcp.f32 %v647_v52 }
 0x4b7   :  { %v641_v54 = vpop.xlane.xlu0 %640 }
 0x4b8   :  { %1721 = vrcp.f32 %v641_v54 }
 0x4b9   :  { %v644_v55 = vpop.xlane.xlu1 %643 }
 0x4ba   :  { %1723 = vrcp.f32 %v644_v55 }
 0x4bb   :  { %v1714_v56 = vpop.eup %1713 }
 0x4bc   :  { %v674_v3 = vmul.f32 %v1714_v56, %v2171_v59 }
 0x4bd   :  { %v638_v57 = vpop.xlane.xlu1 %637 }
 0x4be   :  { %1725 = vrcp.f32 %v638_v57  ;;  %682 = vst.msk [vmem:[#allocation12 + $0x30] sm:$0xff] %vm119_vm1, %v674_v3  ;;  %1579 = vmatprep.subr.msk.mxu0 %vm119_vm1, %v674_v3 }
 0x4bf   :  { %v1716_v58 = vpop.eup %1715  ;;  %1580 = vmatpush3.xpose.msk.msra.mxu0 %vm119_vm1, %v674_v3 }
 0x4c0   :  { %v672_v1 = vmul.f32 %v1716_v58, %v2175_v62 }
 0x4c1   :  { %v1718_v0 = vpop.eup %1717 }
 0x4c2   :  { %v673_v60 = vmul.f32 %v1718_v0, %v2177_v63  ;;  %680 = vst.msk [vmem:[#allocation12 + $0x20] sm:$0xff] %vm119_vm1, %v672_v1 }
 0x4c3   :  { %v1720_v6 = vpop.eup %1719 }
 0x4c4   :  { %681 = vst.msk [vmem:[#allocation12 + $0x28] sm:$0xff] %vm119_vm1, %v673_v60  ;;  %1581 = vmatprep.subr.msk.mxu0 %vm119_vm1, %v673_v60  ;;  %v671_v59 = vmul.f32 %v1720_v6, %v2181_v8 }
 0x4c5   :  { %v1722_v61 = vpop.eup %1721  ;;  %1582 = vmatpush3.xpose.msk.msra.mxu0 %vm119_vm1, %v673_v60 }
 0x4c6   :  { %1583 = vmatprep.subr.msk.mxu0 %vm119_vm1, %v672_v1  ;;  %679 = vst.msk [vmem:[#allocation12 + $0x18] sm:$0xff] %vm119_vm1, %v671_v59  ;;  %v669_v62 = vmul.f32 %v1722_v61, %v2185_v4 }
 0x4c7   :  { %v1724_v9 = vpop.eup %1723 }
 0x4c8   :  { %v670_v63 = vmul.f32 %v1724_v9, %v2189_v10  ;;  %677 = vst.msk [vmem:[#allocation12 + $0x8] sm:$0xff] %vm119_vm1, %v669_v62  ;;  %v1216_v10 = vld [vmem:[#allocation9] sm:$0xff] }
 0x4c9   :  { %1584 = vmatpush3.xpose.msk.msra.mxu0 %vm119_vm1, %v672_v1 }
 0x4ca   :  { %1585 = vmatprep.subr.msk.mxu0 %vm119_vm1, %v671_v59  ;;  %678 = vst.msk [vmem:[#allocation12 + $0x10] sm:$0xff] %vm119_vm1, %v670_v63 }
 0x4cb   :  { %v1726_v8 = vpop.eup %1725 }
 0x4cc   :  { %v668_v11 = vmul.f32 %v1726_v8, %v2195_v14 }
 0x4cd   :  { %1586 = vmatpush3.xpose.msk.msra.mxu0 %vm119_vm1, %v671_v59 }
 0x4ce   :  { %1587 = vmatprep.subr.msk.mxu0 %vm119_vm1, %v670_v63  ;;  %676 = vst.msk [vmem:[#allocation12] sm:$0xff] %vm119_vm1, %v668_v11 }
 0x4d1   :  { %1588 = vmatpush3.xpose.msk.msra.mxu0 %vm119_vm1, %v670_v63 }
 0x4d2   :  { %1589 = vmatprep.subr.msk.mxu0 %vm119_vm1, %v669_v62 }
 0x4d5   :  { %1590 = vmatpush3.xpose.msk.msra.mxu0 %vm119_vm1, %v669_v62 }
 0x4d6   :  { %1591 = vmatprep.subr.msk.mxu0 %vm119_vm1, %v668_v11 }
 0x4d9   :  { %1592 = vmatpush3.xpose.msk.msra.mxu0 %vm119_vm1, %v668_v11 }
 0x4dc   :  { %1594 = vmatmul.mubr.msk.f32.vlgmr.msra.gmra.mxu0 %vm119_vm1, %v2152_v41  ;;  %v1221_v41 = vld [vmem:[%s2337_s9 + $0x8] sm:$0xff] }
 0x4dd   :  { %1596 = vmatprep.mubr.msk.f32.mxu0 %vm119_vm1, %v2156_v43  ;;  %v1220_v43 = vld [vmem:[%s2337_s9] sm:$0xff] }
 0x4e0   :  { %1597 = vmatmul.mubr.msk.f32.gmra.mxu0 %vm119_vm1, %v2160_v45  ;;  %v1223_v45 = vld [vmem:[%s2337_s9 + $0x18] sm:$0xff]  ;;  %s1867_s9 = smov [#allocation12]  }
 0x4e1   :  { %1643 = vmatprep.mubr.msk.f32.mxu0 %vm227_vm3, %v1216_v10  ;;  %s1393_s0 = sshll.u32 %s1867_s9, 4  ;;  %s1394_s0 = int_to_ptr.vmem [resolvable:$true] %s1393_s0 }
 0x4e2   :  { %s1807_s23 = scalar_lea.vmem %s1394_s0, 2048  ;;  %p1812_p7 = scmp.lt.s32.totalorder %s1394_s0, %s1394_s0 }
 0x4e3   :  { %p1808_p6 = scmp.ne.s32.totalorder %s1394_s0, %s1807_s23  ;;  %p1813_p8 = scmp.lt.s32.totalorder %s1807_s23, %s1807_s23 }
 0x4e5   :  { %p1814_p9 = por %p1813_p8, %p1812_p7 }
 0x4e7   :  { %p1815_p10 = pnand %p1814_p9, %p1808_p6 }
 0x55f   :  { %v1631_v4 = vpop.f32.mrf.mxu1 }
 0x561   :  { %v1177_v12 = vpop.f32.mrf.mxu1 }
 0x563   :  { %v1634_v14 = vpop.f32.mrf.mxu1 }
 0x564   :  { %1206 = vrot.lane.b32.xlu0 %v1634_v14, %s1866_s8 }
 0x565   :  { %v1187_v2 = vpop.f32.mrf.mxu1 }
 0x566   :  { %1204 = vrot.lane.b32.xlu1 %v1187_v2, %s1866_s8 }
 0x568   :  { %1200 = vrot.lane.b32.xlu0 %v1177_v12, %s1866_s8 }
 0x56a   :  { %1202 = vrot.lane.b32.xlu1 %v1631_v4, %s1866_s8 }
 0x56c   :  { %1231 = vperm.xlu0 %1661, %v1221_v41  }
 0x56e   :  { %1226 = vperm.xlu1 %1662, %v1220_v43  }
 0x570   :  { %1241 = vperm.xlu0 %1661, %v1223_v45  }
 0x572   :  { %1236 = vperm.xlu1 %1662, %v1222_v5  }
 0x59c   :  { %v1595_v18 = vpop.f32.mrf.mxu0 }
 0x59e   :  { %v786_v19 = vpop.f32.mrf.mxu0 }
 0x5a0   :  { %v1598_v21 = vpop.f32.mrf.mxu0 }
 0x5a2   :  { %v796_v26 = vpop.f32.mrf.mxu0 }
 0x5d6   :  { %v1207_v23 = vpop.permute.xlu0 %1206 }
 0x5d7   :  { %v1215_v25 = vsel %vm119_vm1, %v1598_v21, %v1207_v23 }
 0x5d8   :  { %1635 = vmatprep.subr.mxu0 %v1215_v25  ;;  %v1205_v29 = vpop.permute.xlu1 %1204 }
 0x5d9   :  { %1636 = vmatpush3.msra.mxu0 %v1215_v25  ;;  %v1214_v31 = vsel %vm119_vm1, %v796_v26, %v1205_v29 }
 0x5da   :  { %1637 = vmatprep.subr.mxu0 %v1214_v31  ;;  %v1201_v32 = vpop.permute.xlu0 %1200 }
 0x5db   :  { %1638 = vmatpush3.msra.mxu0 %v1214_v31  ;;  %v1212_v36 = vsel %vm119_vm1, %v786_v19, %v1201_v32 }
 0x5dc   :  { %v1203_v34 = vpop.permute.xlu1 %1202 }
 0x5dd   :  { %v1213_v35 = vsel %vm119_vm1, %v1595_v18, %v1203_v34 }
 0x5de   :  { %1639 = vmatprep.subr.mxu0 %v1213_v35 }
 0x5df   :  { %1640 = vmatpush3.msra.mxu0 %v1213_v35 }
 0x5e0   :  { %1641 = vmatprep.subr.mxu0 %v1212_v36 }
 0x5e1   :  { %1642 = vmatpush3.msra.mxu0 %v1212_v36 }
 0x5e2   :  { %1644 = vmatmul.mubr.msk.f32.vlgmr.msra.gmra.mxu0 %vm227_vm3, %v1217_v37 }
 0x5e3   :  { %1646 = vmatprep.mubr.msk.f32.mxu0 %vm227_vm3, %v1218_v53 }
 0x5e6   :  { %1647 = vmatmul.mubr.msk.f32.gmra.mxu0 %vm227_vm3, %v1219_v38 }
 0x5e7   :  { %v1232_v39 = vpop.permute.xlu0 %1231 }
 0x5e9   :  { %v1227_v40 = vpop.permute.xlu1 %1226 }
 0x6a2   :  { %v1645_v42 = vpop.f32.mrf.mxu0 }
 0x6a3   :  { %v1328_v44 = vadd.f32 %v1645_v42, %v1232_v39 }
 0x6a4   :  { %1818 = shalt.err (!%p1815_p10)
}
 0x6a5   :  { %1399 = dma.vmem_to_hbm [thread:$0]  %s1394_s0, 2048, %s2340_s12, [#allocation13], %s1859_s29, %s1859_s29, %s1860_s30   ;;  %v1322_v16 = vpop.f32.mrf.mxu0  ;;  %v1344_v46 = vmul.f32 %v1342_v7, %v1328_v44  ;;  %v1242_v47 = vpop.permute.xlu0 %1241 }
 0x6a6   :  { %v1323_v13 = vadd.f32 %v1322_v16, %v1227_v40  ;;  %v1237_v30 = vpop.permute.xlu1 %1236  ;;  %s1868_s10 = smov [#allocation11]  }
 0x6a7   :  { %v1648_v17 = vpop.f32.mrf.mxu0  ;;  %v1348_v24 = vadd.f32 %v1344_v46, %v2001_v27  ;;  %s1381_s12 = sshll.u32 %s1868_s10, 4  ;;  %s1382_s12 = int_to_ptr.vmem [resolvable:$true] %s1381_s12 }
 0x6a8   :  { %v1343_v48 = vmul.f32 %v1342_v7, %v1323_v13  ;;  %v1338_v20 = vadd.f32 %v1648_v17, %v1242_v47  ;;  %s1827_s26 = scalar_lea.vmem %s1382_s12, 1024  ;;  %p1832_p12 = scmp.lt.s32.totalorder %s1382_s12, %s1382_s12 }
 0x6a9   :  { %v1332_v33 = vpop.f32.mrf.mxu0  ;;  %1361 = vrot.lane.b32.xlu0 %v1348_v24, %s1866_s8  ;;  %1352 = vst.msk [vmem:[#allocation11 + $0x8] sm:$0xff] %vm119_vm1, %v1348_v24  ;;  %p1828_p11 = scmp.ne.s32.totalorder %s1382_s12, %s1827_s26  ;;  %p1833_p13 = scmp.lt.s32.totalorder %s1827_s26, %s1827_s26 }
 0x6aa   :  { %v1346_v49 = vmul.f32 %v1342_v7, %v1338_v20  ;;  %v1333_v50 = vadd.f32 %v1332_v33, %v1237_v30  ;;  %v1347_v51 = vadd.f32 %v1343_v48, %v2005_v28 }
 0x6ab   :  { %p1834_p0 = por %p1833_p13, %p1832_p12 }
 0x6ac   :  { %v1345_v52 = vmul.f32 %v1342_v7, %v1333_v50  ;;  %1359 = vrot.lane.b32.xlu1 %v1347_v51, %s1866_s8  ;;  %1351 = vst.msk [vmem:[#allocation11] sm:$0xff] %vm119_vm1, %v1347_v51  ;;  %v1350_v54 = vadd.f32 %v1346_v49, %v1981_v15 }
 0x6ad   :  { %p1835_p1 = pnand %p1834_p0, %p1828_p11 }
 0x6ae   :  { %1365 = vrot.lane.b32.xlu0 %v1350_v54, %s1866_s8  ;;  %1354 = vst.msk [vmem:[#allocation11 + $0x18] sm:$0xff] %vm119_vm1, %v1350_v54  ;;  %v1349_v27 = vadd.f32 %v1345_v52, %v1989_v22 }
 0x6b0   :  { %1363 = vrot.lane.b32.xlu1 %v1349_v27, %s1866_s8  ;;  %1353 = vst.msk [vmem:[#allocation11 + $0x10] sm:$0xff] %vm119_vm1, %v1349_v27 }
 0x71b   :  { %v1362_v55 = vpop.permute.xlu0 %1361 }
 0x71c   :  { %1373 = vst.msk [vmem:[#allocation11 + $0x28] sm:$0xff] %vm119_vm1, %v1362_v55 }
 0x71e   :  { %v1360_v28 = vpop.permute.xlu1 %1359 }
 0x71f   :  { %1372 = vst.msk [vmem:[#allocation11 + $0x20] sm:$0xff] %vm119_vm1, %v1360_v28 }
 0x720   :  { %v1366_v56 = vpop.permute.xlu0 %1365 }
 0x721   :  { %1375 = vst.msk [vmem:[#allocation11 + $0x38] sm:$0xff] %vm119_vm1, %v1366_v56 }
 0x722   :  { %v1364_v15 = vpop.permute.xlu1 %1363 }
 0x723   :  { %1374 = vst.msk [vmem:[#allocation11 + $0x30] sm:$0xff] %vm119_vm1, %v1364_v15 }
 0x724   :  { %1838 = shalt.err (!%p1835_p1)
}
 0x725   :  { %1387 = dma.vmem_to_hbm [thread:$0]  %s1382_s12, 1024, %s2339_s11, [#allocation5], %s1859_s29, %s1859_s29, %s1860_s30  }
 0x726   :  { %1853 = dma.done.wait [#allocation5], 1024  }
 0x727   :  { %1854 = vsyncadd [#allocation5], 4294966272 }
 0x728   :  { %1855 = dma.done.wait [#allocation13], 2048  }
 0x729   :  { %1856 = vsyncadd [#allocation13], 4294965248 }
 0x72a   :  { %1406 = vsyncpa [#allocation4], 1 }
 0x72b   :  { %1407 = vsyncpa [#allocation7], 1 }
 0x72c   :  { %1408 = vsyncpa [#allocation10], 1 }
 0x72d   :  { %1409 = vsyncpa [#allocation5], 1 }
 0x72e   :  { %1410 = vsyncpa [#allocation13], 1 }

</bundles_post_ra>
